<compile_context>
chip_gen: v7x
topology: tpu7x:2x2x1
jax: 0.10.0
libtpu: 0.0.40
codegen_flags: <defaults>
</compile_context>

<pallas_src>
import jax
import jax.numpy as jnp
from jax.experimental import pallas as pl
from jax.experimental.pallas import tpu as pltpu


def mlp_kernel(x_ref, w1_ref, w2_ref, w3_ref, o_ref):
    # x_ref : [5, TILE_B]  bf16   (last row is all-ones -> bias feature)
    # w1_ref: [33, 5]      bf16   ([W1 | b1] plus a ones-passthrough row)
    # w2_ref: [17, 33]     bf16   ([W2 | b2] plus a ones-passthrough row)
    # w3_ref: [2, 17]      bf16   ([W3 | b3])
    x = x_ref[...]

    # Layer 1: [33,5] @ [5,TB] -> [33,TB]; ReLU keeps the ones-row at 1.
    h1 = jnp.maximum(
        jnp.dot(w1_ref[...], x, preferred_element_type=jnp.float32), 0.0)

    # Layer 2: [17,33] @ [33,TB] -> [17,TB]
    h2 = jnp.maximum(
        jnp.dot(w2_ref[...], h1.astype(jnp.bfloat16),
                preferred_element_type=jnp.float32), 0.0)

    # Layer 3: [2,17] @ [17,TB] -> [2,TB]  (lane-dense output tile)
    out = jnp.dot(w3_ref[...], h2.astype(jnp.bfloat16),
                  preferred_element_type=jnp.float32)
    o_ref[...] = out.astype(o_ref.dtype)


def _round_up(n, m):
    return ((n + m - 1) // m) * m


def _augment(w, b, add_ones_row):
    """Fold bias into the weight: [out,in] -> [out(+1), in+1]."""
    b = b.reshape(-1, 1)
    w_aug = jnp.concatenate([w, b], axis=1)                       # [out, in+1]
    if add_ones_row:
        ones_row = jnp.zeros((1, w_aug.shape[1]), w_aug.dtype).at[0, -1].set(1.0)
        w_aug = jnp.concatenate([w_aug, ones_row], axis=0)        # [out+1, in+1]
    return w_aug


def prepare_params(params, dtype=jnp.bfloat16):
    """Bias-folded, bf16 weights. Compute once and reuse across calls."""
    w1a = _augment(params["w1"], params["b1"], True).astype(dtype)   # [33, 5]
    w2a = _augment(params["w2"], params["b2"], True).astype(dtype)   # [17, 33]
    w3a = _augment(params["w3"], params["b3"], False).astype(dtype)  # [2, 17]
    return w1a, w2a, w3a


def net_forward(x, params, *, tile_b=16384, out_dtype=jnp.float32,
                feature_major_out=False):
    """x: [B, input_num] float32.
    params: dict with w{i}:[out,in], b{i}:[out,1]  (or a prepare_params tuple).
    Returns [B, output_num] (or [output_num, B] if feature_major_out)."""
    if isinstance(params, tuple):
        w1a, w2a, w3a = params
    else:
        w1a, w2a, w3a = prepare_params(params)

    B, in_num = x.shape
    in_aug = in_num + 1
    out_num = w3a.shape[0]

    # ---- batch-tile selection -------------------------------------------
    padded_min = _round_up(B, 128)
    tile_b = max(128, min(_round_up(int(tile_b), 128), padded_min))
    # Prefer >= 2 grid steps so the "parallel" axis shards across both
    # TensorCores on v7x (harmless elsewhere).
    if padded_min >= 256 and tile_b >= padded_min:
        tile_b = _round_up((padded_min + 1) // 2, 128)
    n_steps = (padded_min + tile_b - 1) // tile_b
    padded_b = n_steps * tile_b

    # ---- build feature-major, bias-augmented input in one fused pass -----
    ones = jnp.ones((B, 1), x.dtype)
    xt = jnp.concatenate([x, ones], axis=1).T            # [in+1, B]
    if padded_b != B:
        xt = jnp.pad(xt, ((0, 0), (0, padded_b - B)))    # padded cols -> exact 0 output
    xt = xt.astype(jnp.bfloat16)

    const_spec = lambda shape: pl.BlockSpec(shape, lambda i: (0, 0))

    out_t = pl.pallas_call(
        mlp_kernel,
        out_shape=jax.ShapeDtypeStruct((out_num, padded_b), out_dtype),
        grid=(n_steps,),
        in_specs=[
            pl.BlockSpec((in_aug, tile_b), lambda i: (0, i)),   # x: streamed
            const_spec(w1a.shape),                              # weights stay
            const_spec(w2a.shape),                              # VMEM-resident
            const_spec(w3a.shape),
        ],
        out_specs=pl.BlockSpec((out_num, tile_b), lambda i: (0, i)),
        compiler_params=pltpu.CompilerParams(
            dimension_semantics=("parallel",),
            vmem_limit_bytes=48 * 1024 * 1024,   # safe on v5e/v6e (128 MiB) and v7x (64 MiB/TC)
        ),
    )(xt, w1a, w2a, w3a)

    out_t = out_t[:, :B]
    return out_t if feature_major_out else out_t.T


def init_params(key, input_num=4, output_num=2):
    """nn.Linear default init (uniform +/- 1/sqrt(fan_in)).
    Weights stored PyTorch-style [out, in]; biases as [out, 1]."""
    dims = [(input_num, 32), (32, 16), (16, output_num)]
    params = {}
    for i, (fan_in, fan_out) in enumerate(dims, start=1):
        key, kw, kb = jax.random.split(key, 3)
        bound = 1.0 / (fan_in ** 0.5)
        params[f"w{i}"] = jax.random.uniform(
            kw, (fan_out, fan_in), jnp.float32, -bound, bound)
        params[f"b{i}"] = jax.random.uniform(
            kb, (fan_out, 1), jnp.float32, -bound, bound)
    return params


def ref_forward(x, params):
    """Pure-JAX f32 reference (same math as the PyTorch module)."""
    h = jnp.maximum(x @ params["w1"].T + params["b1"].T, 0.0)
    h = jnp.maximum(h @ params["w2"].T + params["b2"].T, 0.0)
    return h @ params["w3"].T + params["b3"].T


if __name__ == "__main__":
    key = jax.random.PRNGKey(0)
    key, kx1, kx2 = jax.random.split(key, 3)

    input_num, output_num = 4, 2
    params = init_params(key, input_num, output_num)
    prepared = prepare_params(params)   # reusable bias-folded bf16 weights

    # Case 1: tiny batch (B=8 -> one 128-wide tile, single grid step).
    B1 = 8
    x1 = jax.random.normal(kx1, (B1, input_num), jnp.float32)
    out1 = net_forward(x1, params)
    jax.block_until_ready(out1)
    assert out1.shape == (B1, output_num)
    assert jnp.allclose(out1, ref_forward(x1, params), atol=3e-2, rtol=3e-2), \
        "mismatch vs reference (small batch)"

    # Case 2: B=300 with default tile -> padded 384 -> split to tile 256,
    # grid=(2,) so both v7x TensorCores get work.
    B2 = 300
    x2 = jax.random.normal(kx2, (B2, input_num), jnp.float32)
    out2 = net_forward(x2, prepared)
    jax.block_until_ready(out2)
    assert out2.shape == (B2, output_num)
    assert jnp.allclose(out2, ref_forward(x2, params), atol=3e-2, rtol=3e-2), \
        "mismatch vs reference (auto 2-step grid)"

    # Case 3: explicit small tile (tile_b=128 -> grid=(3,)) to exercise the
    # multi-step streaming path, and the feature-major output fast path.
    out3 = net_forward(x2, params, tile_b=128, feature_major_out=True)
    jax.block_until_ready(out3)
    assert out3.shape == (output_num, B2)
    assert jnp.allclose(out3.T, ref_forward(x2, params), atol=3e-2, rtol=3e-2), \
        "mismatch vs reference (multi-tile, feature-major out)"

    print("KERNEL_OK")
</pallas_src>

<mosaic_0001>
module attributes {stable_mosaic.version = 11 : i64} {
  func.func @mlp_kernel(%arg0: i32, %arg1: memref<5x128xbf16, #tpu.memory_space<vmem>>, %arg2: memref<33x5xbf16, #tpu.memory_space<vmem>>, %arg3: memref<17x33xbf16, #tpu.memory_space<vmem>>, %arg4: memref<2x17xbf16, #tpu.memory_space<vmem>>, %arg5: memref<2x128xf32, #tpu.memory_space<vmem>>) attributes {dimension_semantics = [#tpu.dimension_semantics<parallel>], iteration_bounds = array<i64: 1>, scalar_prefetch = 0 : i64, scratch_operands = 0 : i64, tpu.core_type = #tpu.core_type<tc>, window_params = [{transform_indices = @transform_0, window_bounds = array<i64: 5, 128>}, {pipeline_mode = #tpu.pipeline_mode<synchronous>, transform_indices = @transform_1, window_bounds = array<i64: 33, 5>}, {pipeline_mode = #tpu.pipeline_mode<synchronous>, transform_indices = @transform_2, window_bounds = array<i64: 17, 33>}, {pipeline_mode = #tpu.pipeline_mode<synchronous>, transform_indices = @transform_3, window_bounds = array<i64: 2, 17>}, {transform_indices = @transform_4, window_bounds = array<i64: 2, 128>}]} {
    %c0 = arith.constant 0 : index
    %c0_0 = arith.constant 0 : index
    %0 = vector.load %arg1[%c0, %c0_0] : memref<5x128xbf16, #tpu.memory_space<vmem>>, vector<5x128xbf16>
    %c0_1 = arith.constant 0 : index
    %c0_2 = arith.constant 0 : index
    %1 = vector.load %arg2[%c0_1, %c0_2] : memref<33x5xbf16, #tpu.memory_space<vmem>>, vector<33x5xbf16>
    %cst = arith.constant dense<0.000000e+00> : vector<33x128xf32>
    %2 = tpu.matmul %1, %0, %cst {dimension_numbers = #tpu.dot_dimension_numbers<[1], [0], [0], [1], [0, 0, 1, 1], [], []>} : vector<33x5xbf16>, vector<5x128xbf16>, vector<33x128xf32> -> vector<33x128xf32>
    %cst_3 = arith.constant 0.000000e+00 : f32
    %3 = vector.broadcast %cst_3 : f32 to vector<33x128xf32>
    %4 = arith.maximumf %2, %3 : vector<33x128xf32>
    %c0_4 = arith.constant 0 : index
    %c0_5 = arith.constant 0 : index
    %5 = vector.load %arg3[%c0_4, %c0_5] : memref<17x33xbf16, #tpu.memory_space<vmem>>, vector<17x33xbf16>
    %6 = arith.truncf %4 : vector<33x128xf32> to vector<33x128xbf16>
    %cst_6 = arith.constant dense<0.000000e+00> : vector<17x128xf32>
    %7 = tpu.matmul %5, %6, %cst_6 {dimension_numbers = #tpu.dot_dimension_numbers<[1], [0], [0], [1], [0, 0, 1, 1], [], []>} : vector<17x33xbf16>, vector<33x128xbf16>, vector<17x128xf32> -> vector<17x128xf32>
    %cst_7 = arith.constant 0.000000e+00 : f32
    %8 = vector.broadcast %cst_7 : f32 to vector<17x128xf32>
    %9 = arith.maximumf %7, %8 : vector<17x128xf32>
    %c0_8 = arith.constant 0 : index
    %c0_9 = arith.constant 0 : index
    %10 = vector.load %arg4[%c0_8, %c0_9] : memref<2x17xbf16, #tpu.memory_space<vmem>>, vector<2x17xbf16>
    %11 = arith.truncf %9 : vector<17x128xf32> to vector<17x128xbf16>
    %cst_10 = arith.constant dense<0.000000e+00> : vector<2x128xf32>
    %12 = tpu.matmul %10, %11, %cst_10 {dimension_numbers = #tpu.dot_dimension_numbers<[1], [0], [0], [1], [0, 0, 1, 1], [], []>} : vector<2x17xbf16>, vector<17x128xbf16>, vector<2x128xf32> -> vector<2x128xf32>
    %c0_11 = arith.constant 0 : index
    %c0_12 = arith.constant 0 : index
    %13 = vector.load %arg5[%c0_11, %c0_12] : memref<2x128xf32, #tpu.memory_space<vmem>>, vector<2x128xf32>
    tpu.vector_store %arg5[%c0_11, %c0_12], %12 {strides = array<i32>} : memref<2x128xf32, #tpu.memory_space<vmem>>, vector<2x128xf32>,
    return
  }
  func.func @transform_0(%arg0: i32) -> (i32, i32) {
    %c0_i32 = arith.constant 0 : i32
    %c0_i32_0 = arith.constant 0 : i32
    return %c0_i32, %arg0 : i32, i32
  }
  func.func @transform_1(%arg0: i32) -> (i32, i32) {
    %c0_i32 = arith.constant 0 : i32
    %c0_i32_0 = arith.constant 0 : i32
    %c0_i32_1 = arith.constant 0 : i32
    return %c0_i32, %c0_i32_0 : i32, i32
  }
  func.func @transform_2(%arg0: i32) -> (i32, i32) {
    %c0_i32 = arith.constant 0 : i32
    %c0_i32_0 = arith.constant 0 : i32
    %c0_i32_1 = arith.constant 0 : i32
    return %c0_i32, %c0_i32_0 : i32, i32
  }
  func.func @transform_3(%arg0: i32) -> (i32, i32) {
    %c0_i32 = arith.constant 0 : i32
    %c0_i32_0 = arith.constant 0 : i32
    %c0_i32_1 = arith.constant 0 : i32
    return %c0_i32, %c0_i32_0 : i32, i32
  }
  func.func @transform_4(%arg0: i32) -> (i32, i32) {
    %c0_i32 = arith.constant 0 : i32
    %c0_i32_0 = arith.constant 0 : i32
    return %c0_i32, %arg0 : i32, i32
  }
}

</mosaic_0001>

<bundles_post_ra>
// kernel: tpu_custom_call.1
= control target key start
LH: loop header
LB: loop body
LE: loop exit
PB: predicated region body
PF: predicated region fallthrough
CT: control target
= control target key end

     0   :  { %vm48_vm0 = vcmask 1041408   ;;  %vm49_vm1 = vcmask 1042432   ;;  %v348_v1 = vmov 0.0   ;;  %v349_v2 = vmov 65535   ;;  %s424_s0 = inlined_call_operand.vmem [shape: bf16[5,128], index: 0, kind: input, shape index: {}]   ;;  %s425_s1 = inlined_call_operand.vmem [shape: bf16[33,5], index: 1, kind: input, shape index: {}]   ;;  %s426_s2 = inlined_call_operand.vmem [shape: bf16[17,33], index: 2, kind: input, shape index: {}]   ;;  %s427_s3 = inlined_call_operand.vmem [shape: bf16[2,17], index: 3, kind: input, shape index: {}]   ;;  %s428_s4 = inlined_call_operand.hbm [shape: f32[2,128], index: 4, kind: output, shape index: {}]  }
   0x1   :  { %v19_v0 = vld [vmem:[%s424_s0] sm:$0x7]  ;;  %282 = vmatprep.subr.bf16.mxu0 %v348_v1  ;;  %v50_v3 = vsel %vm48_vm0, 4294967295, %v349_v2  ;;  %vm350_vm2 = vmmov 0   ;;  %vm38_vm3 = vcmask 39936  }
   0x2   :  { %v51_v4 = vsel %vm49_vm1, %v50_v3, 0  ;;  %284 = vmatprep.mubr.msk.bf16.mxu0 %vm350_vm2, %v348_v1  ;;  %v319_v6 = vld [vmem:[%s425_s1] sm:$0xff]  }
   0x3   :  { %v53_v5 = vand.u32 %v51_v4, %v19_v0 }
   0x5   :  { %283 = vmatpush3.bf16.msra.mxu0 %v53_v5 }
   0x6   :  { %9 = vsyncpa [#allocation3], 0  ;;  %v320_v7 = vld [vmem:[%s425_s1 + $0x8] sm:$0xff]   ;;  %v321_v8 = vld [vmem:[%s425_s1 + $0x10] ss:$0 sps:$4 sm:$0x11]  }
   0x7   :  { %v322_v9 = vld [vmem:[%s426_s2] sm:$0xff]   ;;  %vm130_vm4 = vcmask 269312   ;;  %vm137_vm5 = vcmask 1040384   ;;  %v351_v27 = vmov 0   ;;  %vm197_vm6 = vcmask 138240   ;;  %s352_s26 = smov [#allocation2]  }
   0x8   :  { %285 = vmatmul.mubr.msk.bf16.vlgmr.msra.gmra.mrb[0].mxu0 %vm38_vm3, %v319_v6  ;;  %302 = vmatprep.mubr.msk.bf16.mxu1 %vm130_vm4, %v322_v9  ;;  %v139_v28 = vsel %vm137_vm5, 65535, %v351_v27  ;;  %v323_v33 = vld [vmem:[%s426_s2 + $0x8] ss:$0 sps:$4 sm:$0x11]   ;;  %v194_v44 = vld [vmem:[%s427_s3] sm:$0x1] }
   0x9   :  { %288 = vmatprep.mubr.msk.bf16.mxu0 %vm350_vm2, %v348_v1  ;;  %s251_s27 = sshll.u32 %s352_s26, 4  ;;  %s252_s27 = int_to_ptr.vmem [resolvable:$true] %s251_s27 }
   0xa   :  { %s324_s28 = scalar_lea.vmem %s252_s27, 32  ;;  %p329_p1 = scmp.lt.s32.totalorder %s252_s27, %s252_s27 }
   0xb   :  { %p325_p0 = scmp.ne.s32.totalorder %s252_s27, %s324_s28  ;;  %p330_p2 = scmp.lt.s32.totalorder %s324_s28, %s324_s28 }
   0xd   :  { %p331_p3 = por %p330_p2, %p329_p1 }
   0xf   :  { %p332_p4 = pnand %p331_p3, %p325_p0 }
  0x10   :  { %289 = vmatmul.mubr.msk.bf16.gmra.mrb[4].mxu0 %vm38_vm3, %v320_v7 }
  0x11   :  { %292 = vmatprep.mubr.msk.bf16.mxu0 %vm350_vm2, %v348_v1 }
  0x18   :  { %293 = vmatmul.mubr.msk.bf16.gmra.mrb[8].mxu0 %vm38_vm3, %v321_v8 }
  0xdb   :  { %v89_v10 = vpop.f32.mrb[0].mxu0 }
  0xdc   :  { %v286_v11 = vpop.f32.mrb[1].mxu0  ;;  %v111_v13 = vmax.f32 %v89_v10, 0.0 }
  0xdd   :  { %v92_v12 = vpop.f32.mrb[2].mxu0 }
  0xde   :  { %v112_v14 = vmax.f32 %v92_v12, 0.0  ;;  %v287_v15 = vpop.f32.mrb[3].mxu0 }
  0xe0   :  { %v119_v16 = vpack.c.bf16 %v112_v14, %v111_v13 }
  0xe2   :  { %296 = vmatprep.subr.bf16.mxu1 %v119_v16 }
  0xe3   :  { %v97_v17 = vpop.f32.mrb[4].mxu0  ;;  %297 = vmatpush3.bf16.msra.mxu1 %v119_v16 }
  0xe4   :  { %v290_v18 = vpop.f32.mrb[5].mxu0  ;;  %v113_v20 = vmax.f32 %v97_v17, 0.0 }
  0xe5   :  { %v100_v19 = vpop.f32.mrb[6].mxu0 }
  0xe6   :  { %v114_v21 = vmax.f32 %v100_v19, 0.0  ;;  %v291_v22 = vpop.f32.mrb[7].mxu0 }
  0xe8   :  { %v120_v23 = vpack.c.bf16 %v114_v21, %v113_v20 }
  0xea   :  { %298 = vmatprep.subr.bf16.mxu1 %v120_v23 }
  0xeb   :  { %v105_v24 = vpop.f32.mrb[8].mxu0  ;;  %299 = vmatpush3.bf16.msra.mxu1 %v120_v23 }
  0xec   :  { %v115_v25 = vmax.f32 %v105_v24, 0.0  ;;  %v294_v26 = vpop.f32.mrb[9].mxu0 }
  0xed   :  { %v108_v29 = vpop.f32.mrb[10].mxu0 }
  0xee   :  { %v121_v30 = vpack.c.bf16 %v115_v25, %v115_v25  ;;  %v295_v31 = vpop.f32.mrb[11].mxu0 }
  0xf0   :  { %v141_v32 = vand.u32 %v139_v28, %v121_v30 }
  0xf2   :  { %300 = vmatprep.subr.bf16.mxu1 %v141_v32 }
  0xf3   :  { %301 = vmatpush3.bf16.msra.mxu1 %v141_v32 }
  0xf4   :  { %306 = vmatprep.subr.bf16.mxu1 %v348_v1 }
  0xf6   :  { %303 = vmatmul.mubr.msk.bf16.vlgmr.msra.gmra.mrb[0].mxu1 %vm130_vm4, %v323_v33 }
  0xf7   :  { %310 = vmatprep.mubr.msk.bf16.mxu1 %vm350_vm2, %v348_v1 }
 0x1c9   :  { %v304_v34 = vpop.f32.mrb[0].mxu1 }
 0x1ca   :  { %v177_v35 = vpop.f32.mrb[1].mxu1  ;;  %v193_v36 = vmax.f32 %v304_v34, 0.0 }
 0x1cb   :  { %v305_v37 = vpop.f32.mrb[2].mxu1  ;;  %v191_v39 = vmax.f32 %v177_v35, 0.0 }
 0x1cc   :  { %v180_v38 = vpop.f32.mrb[3].mxu1  ;;  %v196_v41 = vpack.c.bf16 %v193_v36, %v193_v36 }
 0x1cd   :  { %v192_v40 = vmax.f32 %v180_v38, 0.0 }
 0x1ce   :  { %v202_v43 = vand.u32 %v196_v41, %v139_v28 }
 0x1cf   :  { %v195_v42 = vpack.c.bf16 %v192_v40, %v191_v39 }
 0x1d1   :  { %307 = vmatpush3.bf16.msra.mxu1 %v195_v42 }
 0x1d2   :  { %308 = vmatprep.subr.bf16.mxu1 %v348_v1 }
 0x1d5   :  { %309 = vmatpush3.bf16.msra.mxu1 %v202_v43 }
 0x1d8   :  { %311 = vmatmul.mubr.msk.bf16.vlgmr.msra.gmra.mrb[4].mxu1 %vm197_vm6, %v194_v44 }
 0x2ab   :  { %v238_v45 = vpop.f32.mrb[4].mxu1 }
 0x2ac   :  { %244 = vst [vmem:[#allocation2] sm:$0x3] %v238_v45  ;;  %v312_v46 = vpop.f32.mrb[5].mxu1 }
 0x2ad   :  { %v241_v47 = vpop.f32.mrb[6].mxu1 }
 0x2ae   :  { %335 = shalt.err (!%p332_p4)
}
 0x2af   :  { %s336_s3 = scalar_lea.hbm %s428_s4, 32 }
 0x2b0   :  { %p337_p5 = scmp.ne.s32.totalorder %s428_s4, %s336_s3  ;;  %p340_p6 = scmp.lt.u32.totalorder %s336_s3, %s428_s4 }
 0x2b2   :  { %p342_p7 = pnand %p340_p6, %p337_p5 }
 0x2b4   :  { %345 = shalt.err (!%p342_p7)
}
 0x2b5   :  { %254 = dma.vmem_to_hbm [thread:$0]  %s252_s27, 32, %s428_s4, [#allocation3]   ;;  %v313_v48 = vpop.f32.mrb[7].mxu1 }
 0x2b6   :  { %346 = dma.done.wait [#allocation3], 32  }
 0x2b7   :  { %347 = vsyncadd [#allocation3], 4294967264 }
 0x2b8   :  { %258 = vsyncpa [#allocation3], 1 }

</bundles_post_ra>
